<compile_context>
chip_gen: v7x
topology: tpu7x:2x2x1
jax: 0.10.0
libtpu: 0.0.40
codegen_flags: <defaults>
</compile_context>

<pallas_src>
import jax
import jax.numpy as jnp
from jax.experimental import pallas as pl
from jax.experimental.pallas import tpu as pltpu

_ROW_TILE = 2048   # rows per grid step for large batches (~6 MiB VMEM w/ dbl-buffering)
_MIN_SPLIT = 32    # below this, one grid step; above, force >= 2 steps (v7x 2 TCs)
_ROW_PACK = 16     # row-tile granularity safe for both f32 (8) and bf16 (16) packing


def _round_up(x, m):
    return (x + m - 1) // m * m


def _pick_row_tile(b):
    """Row tile: big enough to amortize per-step overhead, >=2 steps when it matters."""
    if b <= _MIN_SPLIT:
        return _round_up(b, _ROW_PACK)
    # At least two grid steps (keeps both v7x TensorCores busy), capped at _ROW_TILE.
    return min(_ROW_TILE, _round_up(pl.cdiv(b, 2), _ROW_PACK))


def _ann_kernel(meta_ref, lda_ref, w1m_ref, w1l_ref, b1_ref, w2_ref, b2_ref, o_ref):
    # meta_ref: (TB, m)   lda_ref: (TB, l)        [f32 or bf16]
    # w1m_ref : (m, H)    w1l_ref: (l, H)         [same dtype as activations]
    # b1_ref  : (1, H)    w2_ref : (H, N)   b2_ref: (1, N)   [f32]
    # o_ref   : (TB, N)   [f32, N == true out_dim, no lane padding]
    h = (
        jnp.dot(meta_ref[...], w1m_ref[...], preferred_element_type=jnp.float32)
        + jnp.dot(lda_ref[...], w1l_ref[...], preferred_element_type=jnp.float32)
        + b1_ref[...]
    )
    h = jnp.maximum(h, 0.0)  # ReLU (f32)
    y = jnp.dot(h, w2_ref[...], preferred_element_type=jnp.float32) + b2_ref[...]
    # Exact sigmoid.  For very negative y, exp(-y) -> inf and 1/(1+inf) -> 0 (no NaN).
    o_ref[...] = (1.0 / (1.0 + jnp.exp(-y))).astype(o_ref.dtype)


def prepare_params(w1_t, b1, w2_t, b2, m_dim, dtype=jnp.float32):
    """One-time parameter prep (outside the hot path).

    * split W1 (stored as (full, hidden) = W1^T) at the meta/lda boundary so the
      forward never needs a per-call concat of the activations
    * W1 halves are stored in `dtype` (f32 or bf16 for half the input-path DMA);
      bias / W2 / b2 stay f32 so the bias add, ReLU and sigmoid stay f32
    * no output-dim padding: W2/b2 keep their true (hidden, out)/(1, out) shapes
    """
    full, hidden = w1_t.shape
    out_dim = w2_t.shape[1]
    w1m = jnp.asarray(w1_t[:m_dim], dtype)
    w1l = jnp.asarray(w1_t[m_dim:], dtype)
    b1_2 = jnp.asarray(b1, jnp.float32).reshape(1, hidden)
    w2 = jnp.asarray(w2_t, jnp.float32)
    b2_2 = jnp.asarray(b2, jnp.float32).reshape(1, out_dim)
    return (w1m, w1l, b1_2, w2, b2_2)


@jax.jit
def _ann_batched(meta, lda, w1m, w1l, b1_2, w2, b2_2):
    b, m = meta.shape
    l = lda.shape[1]
    hidden = w1m.shape[1]
    out_dim = w2.shape[1]

    tb = _pick_row_tile(b)
    grid = (pl.cdiv(b, tb),)

    return pl.pallas_call(
        _ann_kernel,
        out_shape=jax.ShapeDtypeStruct((b, out_dim), jnp.float32),
        grid=grid,
        in_specs=[
            pl.BlockSpec((tb, m), lambda i: (i, 0)),
            pl.BlockSpec((tb, l), lambda i: (i, 0)),
            # Constant index_maps: tiny weights stay VMEM-resident across steps.
            pl.BlockSpec((m, hidden), lambda i: (0, 0)),
            pl.BlockSpec((l, hidden), lambda i: (0, 0)),
            pl.BlockSpec((1, hidden), lambda i: (0, 0)),
            pl.BlockSpec((hidden, out_dim), lambda i: (0, 0)),
            pl.BlockSpec((1, out_dim), lambda i: (0, 0)),
        ],
        out_specs=pl.BlockSpec((tb, out_dim), lambda i: (i, 0)),
        compiler_params=pltpu.CompilerParams(
            dimension_semantics=("parallel",)
        ),
    )(meta, lda, w1m, w1l, b1_2, w2, b2_2)


def ann_forward(meta_data, lda_data, params):
    """Matches ANN.forward.

    1-D meta/lda (the module's exact signature) -> (out,) vector.
    2-D (B, m) / (B, l) batched inputs          -> (B, out).
    Activations are cast to the stored W1 dtype (no-op if they already match).
    """
    w1m, w1l, b1_2, w2, b2_2 = params
    act_dtype = w1m.dtype
    single = meta_data.ndim == 1
    meta = jnp.atleast_2d(jnp.asarray(meta_data, act_dtype))
    lda = jnp.atleast_2d(jnp.asarray(lda_data, act_dtype))
    out = _ann_batched(meta, lda, w1m, w1l, b1_2, w2, b2_2)
    return out[0] if single else out


if __name__ == "__main__":
    m_dim, l_dim = 12, 20
    full = m_dim + l_dim          # 32
    hidden = 32
    out_dim = 8
    batch = 20                    # single partial-block path
    batch2 = 70                   # multi-step grid (2 steps) + partial edge block

    key = jax.random.PRNGKey(0)
    k_meta, k_lda, k_w1, k_b1, k_w2, k_b2, k_m2, k_l2 = jax.random.split(key, 8)

    meta_b = jax.random.normal(k_meta, (batch, m_dim), dtype=jnp.float32)
    lda_b = jax.random.normal(k_lda, (batch, l_dim), dtype=jnp.float32)
    meta_b2 = jax.random.normal(k_m2, (batch2, m_dim), dtype=jnp.float32)
    lda_b2 = jax.random.normal(k_l2, (batch2, l_dim), dtype=jnp.float32)

    # PyTorch Linear weight is (out, in); keep the transposed (in, out) layout
    # so the kernel computes x @ W directly.
    bound1 = 1.0 / jnp.sqrt(full)
    w1_t = jax.random.uniform(k_w1, (full, hidden), minval=-bound1, maxval=bound1)
    b1 = jax.random.uniform(k_b1, (hidden,), minval=-bound1, maxval=bound1)
    bound2 = 1.0 / jnp.sqrt(hidden)
    w2_t = jax.random.uniform(k_w2, (hidden, out_dim), minval=-bound2, maxval=bound2)
    b2 = jax.random.uniform(k_b2, (out_dim,), minval=-bound2, maxval=bound2)

    # --- f32 path (exact parity with the PyTorch module) ---
    params_f32 = prepare_params(w1_t, b1, w2_t, b2, m_dim, dtype=jnp.float32)
    out_b = jax.block_until_ready(ann_forward(meta_b, lda_b, params_f32))
    out_b2 = jax.block_until_ready(ann_forward(meta_b2, lda_b2, params_f32))
    out_1 = jax.block_until_ready(ann_forward(meta_b[0], lda_b[0], params_f32))

    # Plain-JAX references.
    def ref_fn(meta, lda):
        x = jnp.concatenate([meta, lda], axis=1)
        return jax.nn.sigmoid(jnp.maximum(x @ w1_t + b1, 0.0) @ w2_t + b2)

    ref_b = ref_fn(meta_b, lda_b)
    ref_b2 = ref_fn(meta_b2, lda_b2)

    assert out_b.shape == (batch, out_dim)
    assert out_b2.shape == (batch2, out_dim)
    assert out_1.shape == (out_dim,)
    assert jnp.allclose(out_b, ref_b, atol=1e-5), "f32 batched mismatch vs reference"
    assert jnp.allclose(out_b2, ref_b2, atol=1e-5), "f32 multi-step mismatch vs reference"
    assert jnp.allclose(out_1, ref_b[0], atol=1e-5), "f32 single-sample mismatch vs reference"

    # --- bf16 input-DMA path (halved input bytes; f32 accumulate/epilogue) ---
    params_bf16 = prepare_params(w1_t, b1, w2_t, b2, m_dim, dtype=jnp.bfloat16)
    out_bf = jax.block_until_ready(ann_forward(meta_b2, lda_b2, params_bf16))
    assert out_bf.shape == (batch2, out_dim)
    assert jnp.allclose(out_bf, ref_b2, atol=2e-2), "bf16 batched mismatch vs reference"

    print("KERNEL_OK")
</pallas_src>

<mosaic_0001>
module attributes {stable_mosaic.version = 11 : i64} {
  func.func @_ann_kernel(%arg0: i32, %arg1: memref<32x12xf32, #tpu.memory_space<vmem>>, %arg2: memref<32x20xf32, #tpu.memory_space<vmem>>, %arg3: memref<12x32xf32, #tpu.memory_space<vmem>>, %arg4: memref<20x32xf32, #tpu.memory_space<vmem>>, %arg5: memref<1x32xf32, #tpu.memory_space<vmem>>, %arg6: memref<32x8xf32, #tpu.memory_space<vmem>>, %arg7: memref<1x8xf32, #tpu.memory_space<vmem>>, %arg8: memref<32x8xf32, #tpu.memory_space<vmem>>) attributes {dimension_semantics = [#tpu.dimension_semantics<parallel>], iteration_bounds = array<i64: 1>, scalar_prefetch = 0 : i64, scratch_operands = 0 : i64, tpu.core_type = #tpu.core_type<tc>, window_params = [{transform_indices = @transform_0, window_bounds = array<i64: 32, 12>}, {transform_indices = @transform_1, window_bounds = array<i64: 32, 20>}, {pipeline_mode = #tpu.pipeline_mode<synchronous>, transform_indices = @transform_2, window_bounds = array<i64: 12, 32>}, {pipeline_mode = #tpu.pipeline_mode<synchronous>, transform_indices = @transform_3, window_bounds = array<i64: 20, 32>}, {pipeline_mode = #tpu.pipeline_mode<synchronous>, transform_indices = @transform_4, window_bounds = array<i64: 1, 32>}, {pipeline_mode = #tpu.pipeline_mode<synchronous>, transform_indices = @transform_5, window_bounds = array<i64: 32, 8>}, {pipeline_mode = #tpu.pipeline_mode<synchronous>, transform_indices = @transform_6, window_bounds = array<i64: 1, 8>}, {transform_indices = @transform_7, window_bounds = array<i64: 32, 8>}]} {
    %c0 = arith.constant 0 : index
    %c0_0 = arith.constant 0 : index
    %0 = vector.load %arg1[%c0, %c0_0] : memref<32x12xf32, #tpu.memory_space<vmem>>, vector<32x12xf32>
    %c0_1 = arith.constant 0 : index
    %c0_2 = arith.constant 0 : index
    %1 = vector.load %arg3[%c0_1, %c0_2] : memref<12x32xf32, #tpu.memory_space<vmem>>, vector<12x32xf32>
    %cst = arith.constant dense<0.000000e+00> : vector<32x32xf32>
    %2 = tpu.matmul %0, %1, %cst {dimension_numbers = #tpu.dot_dimension_numbers<[1], [0], [0], [1], [0, 0, 1, 1], [], []>} : vector<32x12xf32>, vector<12x32xf32>, vector<32x32xf32> -> vector<32x32xf32>
    %c0_3 = arith.constant 0 : index
    %c0_4 = arith.constant 0 : index
    %3 = vector.load %arg2[%c0_3, %c0_4] : memref<32x20xf32, #tpu.memory_space<vmem>>, vector<32x20xf32>
    %c0_5 = arith.constant 0 : index
    %c0_6 = arith.constant 0 : index
    %4 = vector.load %arg4[%c0_5, %c0_6] : memref<20x32xf32, #tpu.memory_space<vmem>>, vector<20x32xf32>
    %cst_7 = arith.constant dense<0.000000e+00> : vector<32x32xf32>
    %5 = tpu.matmul %3, %4, %cst_7 {dimension_numbers = #tpu.dot_dimension_numbers<[1], [0], [0], [1], [0, 0, 1, 1], [], []>} : vector<32x20xf32>, vector<20x32xf32>, vector<32x32xf32> -> vector<32x32xf32>
    %6 = arith.addf %2, %5 : vector<32x32xf32>
    %c0_8 = arith.constant 0 : index
    %c0_9 = arith.constant 0 : index
    %7 = vector.load %arg5[%c0_8, %c0_9] : memref<1x32xf32, #tpu.memory_space<vmem>>, vector<1x32xf32>
    %8 = vector.broadcast %7 : vector<1x32xf32> to vector<32x32xf32>
    %9 = arith.addf %6, %8 : vector<32x32xf32>
    %cst_10 = arith.constant 0.000000e+00 : f32
    %10 = vector.broadcast %cst_10 : f32 to vector<32x32xf32>
    %11 = arith.maximumf %9, %10 : vector<32x32xf32>
    %c0_11 = arith.constant 0 : index
    %c0_12 = arith.constant 0 : index
    %12 = vector.load %arg6[%c0_11, %c0_12] : memref<32x8xf32, #tpu.memory_space<vmem>>, vector<32x8xf32>
    %cst_13 = arith.constant dense<0.000000e+00> : vector<32x8xf32>
    %13 = tpu.matmul %11, %12, %cst_13 {dimension_numbers = #tpu.dot_dimension_numbers<[1], [0], [0], [1], [0, 0, 1, 1], [], []>} : vector<32x32xf32>, vector<32x8xf32>, vector<32x8xf32> -> vector<32x8xf32>
    %c0_14 = arith.constant 0 : index
    %c0_15 = arith.constant 0 : index
    %14 = vector.load %arg7[%c0_14, %c0_15] : memref<1x8xf32, #tpu.memory_space<vmem>>, vector<1x8xf32>
    %15 = vector.broadcast %14 : vector<1x8xf32> to vector<32x8xf32>
    %16 = arith.addf %13, %15 : vector<32x8xf32>
    %cst_16 = arith.constant 0.000000e+00 : f32
    %17 = vector.broadcast %cst_16 : f32 to vector<32x8xf32>
    %18 = arith.subf %17, %16 : vector<32x8xf32>
    %19 = math.exp %18 : vector<32x8xf32>
    %cst_17 = arith.constant 1.000000e+00 : f32
    %20 = vector.broadcast %cst_17 : f32 to vector<32x8xf32>
    %21 = arith.addf %20, %19 : vector<32x8xf32>
    %cst_18 = arith.constant 1.000000e+00 : f32
    %22 = vector.broadcast %cst_18 : f32 to vector<32x8xf32>
    %23 = arith.divf %22, %21 : vector<32x8xf32>
    %c0_19 = arith.constant 0 : index
    %c0_20 = arith.constant 0 : index
    %24 = vector.load %arg8[%c0_19, %c0_20] : memref<32x8xf32, #tpu.memory_space<vmem>>, vector<32x8xf32>
    tpu.vector_store %arg8[%c0_19, %c0_20], %23 {strides = array<i32>} : memref<32x8xf32, #tpu.memory_space<vmem>>, vector<32x8xf32>,
    return
  }
  func.func @transform_0(%arg0: i32) -> (i32, i32) {
    %c0_i32 = arith.constant 0 : i32
    %c0_i32_0 = arith.constant 0 : i32
    return %arg0, %c0_i32 : i32, i32
  }
  func.func @transform_1(%arg0: i32) -> (i32, i32) {
    %c0_i32 = arith.constant 0 : i32
    %c0_i32_0 = arith.constant 0 : i32
    return %arg0, %c0_i32 : i32, i32
  }
  func.func @transform_2(%arg0: i32) -> (i32, i32) {
    %c0_i32 = arith.constant 0 : i32
    %c0_i32_0 = arith.constant 0 : i32
    %c0_i32_1 = arith.constant 0 : i32
    return %c0_i32, %c0_i32_0 : i32, i32
  }
  func.func @transform_3(%arg0: i32) -> (i32, i32) {
    %c0_i32 = arith.constant 0 : i32
    %c0_i32_0 = arith.constant 0 : i32
    %c0_i32_1 = arith.constant 0 : i32
    return %c0_i32, %c0_i32_0 : i32, i32
  }
  func.func @transform_4(%arg0: i32) -> (i32, i32) {
    %c0_i32 = arith.constant 0 : i32
    %c0_i32_0 = arith.constant 0 : i32
    %c0_i32_1 = arith.constant 0 : i32
    return %c0_i32, %c0_i32_0 : i32, i32
  }
  func.func @transform_5(%arg0: i32) -> (i32, i32) {
    %c0_i32 = arith.constant 0 : i32
    %c0_i32_0 = arith.constant 0 : i32
    %c0_i32_1 = arith.constant 0 : i32
    return %c0_i32, %c0_i32_0 : i32, i32
  }
  func.func @transform_6(%arg0: i32) -> (i32, i32) {
    %c0_i32 = arith.constant 0 : i32
    %c0_i32_0 = arith.constant 0 : i32
    %c0_i32_1 = arith.constant 0 : i32
    return %c0_i32, %c0_i32_0 : i32, i32
  }
  func.func @transform_7(%arg0: i32) -> (i32, i32) {
    %c0_i32 = arith.constant 0 : i32
    %c0_i32_0 = arith.constant 0 : i32
    return %arg0, %c0_i32 : i32, i32
  }
}

</mosaic_0001>

<bundles_post_ra>
// kernel: _ann_batched.1
= control target key start
LH: loop header
LB: loop body
LE: loop exit
PB: predicated region body
PF: predicated region fallthrough
CT: control target
= control target key end

     0   :  { %vm52_vm0 = vcmask 1043456   ;;  %vm141_vm1 = vcmask 97280   ;;  %vm559_vm2 = vmmov 1   ;;  %vm39_vm4 = vcmask 162816   ;;  %s677_s0 = inlined_call_operand.vmem [shape: f32[20,12], index: 0, kind: input, shape index: {}]   ;;  %s678_s1 = inlined_call_operand.vmem [shape: f32[20,20], index: 1, kind: input, shape index: {}]   ;;  %s679_s2 = inlined_call_operand.vmem [shape: f32[12,32], index: 2, kind: input, shape index: {}]   ;;  %s680_s3 = inlined_call_operand.vmem [shape: f32[20,32], index: 3, kind: input, shape index: {}]   ;;  %s681_s4 = inlined_call_operand.vmem [shape: f32[1,32], index: 4, kind: input, shape index: {}]   ;;  %s682_s5 = inlined_call_operand.vmem [shape: f32[32,8], index: 5, kind: input, shape index: {}]   ;;  %s683_s6 = inlined_call_operand.vmem [shape: f32[1,8], index: 6, kind: input, shape index: {}]   ;;  %s684_s7 = inlined_call_operand.vmem [shape: f32[20,8], index: 7, kind: output, shape index: {}]  }
   0x1   :  { %v36_v0 = vld [vmem:[%s680_s3] sm:$0xff]  ;;  %v37_v1 = vld [vmem:[%s680_s3 + $0x8] sm:$0xff]  ;;  %vm521_vm3 = vmpackc.low %vm52_vm0, %vm559_vm2  ;;  %vm268_vm5 = vcmask 261120   ;;  %vm390_vm6 = vcmask 64512  }
   0x2   :  { %v30_v2 = vld [vmem:[%s679_s2] sm:$0xff]  ;;  %v516_v3 = vpack.c.bf16 %v37_v1, %v36_v0  ;;  %v31_v4 = vld [vmem:[%s679_s2 + $0x8] sm:$0xf]  ;;  %v38_v6 = vld [vmem:[%s680_s3 + $0x10] sm:$0xf] }
   0x3   :  { %v520_v5 = vpack.c.bf16 %v31_v4, %v30_v2  ;;  %v26_v7 = vld [vmem:[%s677_s0] sm:$0xff]  ;;  %v27_v9 = vld [vmem:[%s677_s0 + $0x8] sm:$0xff]  ;;  %v28_v11 = vld [vmem:[%s677_s0 + $0x10] sm:$0xff] }
   0x4   :  { %517 = vmatprep.subr.bf16.mxu0 %v516_v3  ;;  %496 = vmatprep.mubr.msk.f32.mxu1 %vm141_vm1, %v26_v7  ;;  %v32_v8 = vld [vmem:[%s678_s1] sm:$0xff]  ;;  %v33_v10 = vld [vmem:[%s678_s1 + $0x8] sm:$0xff]  ;;  %v34_v12 = vld [vmem:[%s678_s1 + $0x10] sm:$0xff] }
   0x5   :  { %519 = vmatpush3.bf16.msra.mxu0 %v516_v3  ;;  %522 = vmatprep.subr.msk.bf16.mxu1 %vm521_vm3, %v520_v5  ;;  %v29_v13 = vld [vmem:[%s677_s0 + $0x18] sm:$0xff]  ;;  %v257_v15 = vld [vmem:[%s682_s5] sm:$0xff]  ;;  %v258_v16 = vld [vmem:[%s682_s5 + $0x8] sm:$0xff] }
   0x6   :  { %525 = vmatpush3.bf16.msk.msra.mxu1 %vm521_vm3, %v520_v5  ;;  %484 = vmatprep.subr.msk.mxu0 %vm52_vm0, %v38_v6  ;;  %v35_v14 = vld [vmem:[%s678_s1 + $0x18] sm:$0xff]  ;;  %v526_v17 = vpack.c.bf16 %v258_v16, %v257_v15  ;;  %v259_v18 = vld [vmem:[%s682_s5 + $0x10] sm:$0xff]  ;;  %v453_v23 = vld [vmem:[%s681_s4] ss:$0 sm:$0xff] }
   0x7   :  { %486 = vmatprep.mubr.msk.f32.mxu0 %vm39_vm4, %v32_v8  ;;  %v260_v19 = vld [vmem:[%s682_s5 + $0x18] sm:$0xff]  ;;  %v454_v42 = vld [vmem:[%s683_s6] ss:$0 sm:$0xff] }
   0x8   :  { %534 = vmatprep.subr.bf16.mxu1 %v526_v17  ;;  %v530_v20 = vpack.c.bf16 %v260_v19, %v259_v18 }
   0x9   :  { %485 = vmatpush3.msk.msra.mxu0 %vm52_vm0, %v38_v6  ;;  %497 = vmatmul.mubr.msk.f32.vlgmr.msra.gmra.mrb[0].mxu1 %vm141_vm1, %v27_v9 }
   0xa   :  { %487 = vmatmul.mubr.msk.f32.vlgmr.msra.gmra.mrb[0].mxu0 %vm39_vm4, %v33_v10  ;;  %499 = vmatprep.mubr.msk.f32.mxu1 %vm141_vm1, %v28_v11 }
   0xb   :  { %489 = vmatprep.mubr.msk.f32.mxu0 %vm39_vm4, %v34_v12  ;;  %527 = vmatprep.subr.bf16.mxu0 %v526_v17 }
   0xc   :  { %529 = vmatpush3.bf16.msra.mxu0 %v526_v17  ;;  %536 = vmatpush3.bf16.msra.mxu1 %v526_v17 }
   0xd   :  { %500 = vmatmul.mubr.msk.f32.gmra.mrb[2].mxu1 %vm141_vm1, %v29_v13  ;;  %531 = vmatprep.subr.bf16.mxu0 %v530_v20 }
   0xe   :  { %490 = vmatmul.mubr.msk.f32.gmra.mrb[2].mxu0 %vm39_vm4, %v35_v14  ;;  %535 = vmatprep.subr.bf16.mxu1 %v530_v20 }
  0x10   :  { %533 = vmatpush3.bf16.msra.mxu0 %v530_v20  ;;  %537 = vmatpush3.bf16.msra.mxu1 %v530_v20 }
  0xdc   :  { %v498_v21 = vpop.f32.mrb[0].mxu1 }
  0xdd   :  { %v488_v22 = vpop.f32.mrb[0].mxu0  ;;  %v223_v24 = vpop.f32.mrb[1].mxu1 }
  0xde   :  { %v229_v25 = vadd.f32 %v498_v21, %v488_v22  ;;  %v122_v26 = vpop.f32.mrb[1].mxu0 }
  0xdf   :  { %v224_v27 = vadd.f32 %v223_v24, %v122_v26 }
  0xe0   :  { %v250_v28 = vadd.f32 %v453_v23, %v229_v25  ;;  %v501_v29 = vpop.f32.mrb[2].mxu1 }
  0xe1   :  { %v249_v30 = vadd.f32 %v453_v23, %v224_v27  ;;  %v491_v31 = vpop.f32.mrb[2].mxu0  ;;  %v233_v32 = vpop.f32.mrb[3].mxu1 }
  0xe2   :  { %v239_v33 = vadd.f32 %v501_v29, %v491_v31  ;;  %v132_v34 = vpop.f32.mrb[3].mxu0  ;;  %v254_v37 = vmax.f32 %v250_v28, 0.0 }
  0xe3   :  { %v253_v35 = vmax.f32 %v249_v30, 0.0  ;;  %v234_v36 = vadd.f32 %v233_v32, %v132_v34 }
  0xe4   :  { %v252_v38 = vadd.f32 %v453_v23, %v239_v33 }
  0xe5   :  { %v251_v39 = vadd.f32 %v453_v23, %v234_v36  ;;  %510 = vmatprep.mubr.msk.f32.mxu0 %vm268_vm5, %v253_v35 }
  0xe6   :  { %511 = vmatmul.mubr.msk.f32.vlgmr.msra.gmra.mrb[4].mxu0 %vm268_vm5, %v254_v37  ;;  %v256_v41 = vmax.f32 %v252_v38, 0.0 }
  0xe7   :  { %v255_v40 = vmax.f32 %v251_v39, 0.0 }
  0xe9   :  { %513 = vmatprep.mubr.msk.f32.mxu1 %vm268_vm5, %v255_v40 }
  0xea   :  { %514 = vmatmul.mubr.msk.f32.vlgmr.msra.gmra.mrb[4].mxu1 %vm268_vm5, %v256_v41 }
 0x1b9   :  { %v512_v43 = vpop.f32.mrb[4].mxu0 }
 0x1ba   :  { %v353_v44 = vadd.f32 %v512_v43, %v454_v42  ;;  %v347_v45 = vpop.f32.mrb[5].mxu0 }
 0x1bb   :  { %v348_v46 = vadd.f32 %v454_v42, %v347_v45 }
 0x1bc   :  { %v367_v47 = vsub.f32 0.0, %v353_v44 }
 0x1bd   :  { %v366_v48 = vsub.f32 0.0, %v348_v46  ;;  %v515_v49 = vpop.f32.mrb[4].mxu1 }
 0x1be   :  { %v372_v50 = vmul.f32 1.442695, %v367_v47  ;;  %v363_v51 = vadd.f32 %v515_v49, %v454_v42  ;;  %v357_v52 = vpop.f32.mrb[5].mxu1 }
 0x1bf   :  { %v370_v53 = vmul.f32 1.442695, %v366_v48  ;;  %v358_v54 = vadd.f32 %v454_v42, %v357_v52 }
 0x1c0   :  { %543 = vpow2.f32 %v372_v50  ;;  %v369_v55 = vsub.f32 0.0, %v363_v51 }
 0x1c1   :  { %545 = vpow2.f32 %v370_v53  ;;  %v368_v56 = vsub.f32 0.0, %v358_v54 }
 0x1c2   :  { %v376_v57 = vmul.f32 1.442695, %v369_v55 }
 0x1c3   :  { %v374_v58 = vmul.f32 1.442695, %v368_v56 }
 0x1c4   :  { %547 = vpow2.f32 %v376_v57 }
 0x1c5   :  { %549 = vpow2.f32 %v374_v58 }
 0x1ca   :  { %v544_v59 = vpop.eup %543 }
 0x1cb   :  { %v546_v60 = vpop.eup %545  ;;  %v379_v61 = vadd.f32 1.0, %v544_v59 }
 0x1cc   :  { %v378_v62 = vadd.f32 1.0, %v546_v60 }
 0x1cd   :  { %551 = vrcp.f32 %v379_v61 }
 0x1ce   :  { %v548_v63 = vpop.eup %547  ;;  %553 = vrcp.f32 %v378_v62 }
 0x1cf   :  { %v550_v0 = vpop.eup %549  ;;  %v381_v1 = vadd.f32 1.0, %v548_v63 }
 0x1d0   :  { %v380_v2 = vadd.f32 1.0, %v550_v0 }
 0x1d1   :  { %555 = vrcp.f32 %v381_v1 }
 0x1d2   :  { %557 = vrcp.f32 %v380_v2 }
 0x1d7   :  { %v552_v3 = vpop.eup %551 }
 0x1d8   :  { %v554_v4 = vpop.eup %553  ;;  %392 = vst.msk [vmem:[#allocation2 + $0x8] sm:$0xff] %vm390_vm6, %v552_v3 }
 0x1d9   :  { %391 = vst.msk [vmem:[#allocation2] sm:$0xff] %vm390_vm6, %v554_v4 }
 0x1db   :  { %v556_v5 = vpop.eup %555 }
 0x1dc   :  { %v558_v6 = vpop.eup %557 }
 0x1dd   :  { %393 = vst.msk [vmem:[#allocation2 + $0x10] sm:$0xff] %vm390_vm6, %v558_v6 }
 0x1df   :  { %v430_v7 = vld [vmem:[#allocation2 + $0x8] sm:$0xff] }
 0x1e0   :  { %431 = vst [vmem:[%s684_s7 + $0x8] sm:$0xff] %v430_v7  ;;  %v428_v8 = vld [vmem:[#allocation2] sm:$0xff] }
 0x1e1   :  { %429 = vst [vmem:[%s684_s7] sm:$0xff] %v428_v8 }
 0x1e4   :  { %v432_v9 = vld [vmem:[#allocation2 + $0x10] sm:$0xff] }
 0x1e5   :  { %433 = vst [vmem:[%s684_s7 + $0x10] sm:$0xff] %v432_v9 }

</bundles_post_ra>
